<compile_context>
chip_gen: v7x
topology: tpu7x:2x2x1
jax: 0.10.0
libtpu: 0.0.40
codegen_flags: <defaults>
</compile_context>

<pallas_src>
import functools

import jax
import jax.numpy as jnp
from jax.experimental import pallas as pl
from jax.experimental.pallas import tpu as pltpu


def _focal_kernel(p_ref, t_ref, bce_out_ref, fw_out_ref, *, alpha, gamma,
                  gamma_int, valid_rows, tile_rows, lane, masked,
                  assume_binary_targets):
    i = pl.program_id(0)

    p = p_ref[...].astype(jnp.float32)
    t = t_ref[...].astype(jnp.float32)

    if masked:
        # Only the (possibly ragged) last tile has rows past the real data;
        # neutralize them (p=1, t=1 => bce=0 and focal weight=0).
        row_ids = jax.lax.broadcasted_iota(jnp.int32, p.shape, 0)
        valid = (i * tile_rows + row_ids) < valid_rows
        p = jnp.where(valid, p, 1.0)
        t = jnp.where(valid, t, 1.0)

    pt = jnp.where(t == 1.0, p, 1.0 - p)
    one_minus_pt = 1.0 - pt

    # Binary cross entropy per element (torch clamps each log term at -100).
    if assume_binary_targets:
        # Valid only for strictly {0,1} targets (single EUP log per element).
        bce = -jnp.maximum(jnp.log(pt), -100.0)
    else:
        log_p = jnp.maximum(jnp.log(p), -100.0)
        log_1mp = jnp.maximum(jnp.log(1.0 - p), -100.0)
        bce = -(t * log_p + (1.0 - t) * log_1mp)

    # Focal weighting term.
    alpha_w = t * alpha + (1.0 - t) * (1.0 - alpha)
    if gamma_int is not None:
        mod = jnp.ones_like(one_minus_pt)
        for _ in range(gamma_int):
            mod = mod * one_minus_pt
    else:
        mod = one_minus_pt ** jnp.float32(gamma)
    fw = alpha_w * mod

    # Fold the (tile_rows, 128) tile to a lane-dense (8, 128) partial using
    # only sublane-group adds (VPU); the final scalar reduce happens once in
    # the wrapper.
    groups = tile_rows // 8
    bce_out_ref[0] = jnp.sum(bce.reshape(groups, 8, lane), axis=0)
    fw_out_ref[0] = jnp.sum(fw.reshape(groups, 8, lane), axis=0)


def focal_loss(preds, target, alpha=0.25, gamma=2, tile_rows=1024,
               assume_binary_targets=False):
    """Pallas implementation of FocalLoss.forward(preds, target)."""
    assert preds.shape == target.shape
    lane = 128

    flat_p = preds.reshape(-1)
    flat_t = target.reshape(-1)
    if flat_t.dtype != flat_p.dtype:
        flat_t = flat_t.astype(flat_p.dtype)

    n = int(flat_p.shape[0])

    # Sublane granularity: keep the row count a multiple of the packing factor
    # (8 for 4-byte, 16 for 2-byte, 32 for 1-byte dtypes).
    itemsize = jnp.dtype(flat_p.dtype).itemsize
    sub = {1: 32, 2: 16}.get(itemsize, 8)
    granule = lane * sub

    n_pad = pl.cdiv(n, granule) * granule
    pad = n_pad - n
    if pad:
        # Neutral padding (p=1, t=1) contributes exactly zero to both sums.
        # Only happens when n is not already a multiple of 128*sub.
        flat_p = jnp.pad(flat_p, (0, pad), constant_values=1)
        flat_t = jnp.pad(flat_t, (0, pad), constant_values=1)

    rows = n_pad // lane
    p2 = flat_p.reshape(rows, lane)
    t2 = flat_t.reshape(rows, lane)

    # Tile size: multiple of the sublane granule, capped by the row count.
    tile_rows = max(sub, (int(tile_rows) // sub) * sub)
    tile_rows = min(tile_rows, rows)

    num_blocks = pl.cdiv(rows, tile_rows)
    # Masking only needed if the last block hangs past the real rows.
    masked = (num_blocks * tile_rows) != rows

    # Robust integer-gamma fast path (covers gamma=2 and gamma=2.0).
    gamma_int = None
    if isinstance(gamma, (int, float)) and not isinstance(gamma, bool):
        if float(gamma) == int(gamma) and 0 <= int(gamma) <= 8:
            gamma_int = int(gamma)

    kernel = functools.partial(
        _focal_kernel,
        alpha=float(alpha),
        gamma=gamma,
        gamma_int=gamma_int,
        valid_rows=rows,
        tile_rows=tile_rows,
        lane=lane,
        masked=masked,
        assume_binary_targets=assume_binary_targets,
    )

    bce_parts, fw_parts = pl.pallas_call(
        kernel,
        out_shape=(
            jax.ShapeDtypeStruct((num_blocks, 8, lane), jnp.float32),
            jax.ShapeDtypeStruct((num_blocks, 8, lane), jnp.float32),
        ),
        grid_spec=pltpu.PrefetchScalarGridSpec(
            num_scalar_prefetch=0,
            grid=(num_blocks,),
            in_specs=[
                pl.BlockSpec((tile_rows, lane), lambda i: (i, 0)),
                pl.BlockSpec((tile_rows, lane), lambda i: (i, 0)),
            ],
            out_specs=[
                pl.BlockSpec((1, 8, lane), lambda i: (i, 0, 0)),
                pl.BlockSpec((1, 8, lane), lambda i: (i, 0, 0)),
            ],
        ),
        compiler_params=pltpu.CompilerParams(
            dimension_semantics=("parallel",),
        ),
    )(p2, t2)

    bce_sum = jnp.sum(bce_parts)
    fw_sum = jnp.sum(fw_parts)
    # out = sum(alpha_w * (1-pt)^gamma) * celoss  (scalar celoss broadcast).
    return (bce_sum * fw_sum).astype(preds.dtype)


def focal_loss_ref(preds, target, alpha=0.25, gamma=2):
    """Pure-JAX reference matching the PyTorch forward."""
    p = preds.astype(jnp.float32)
    t = target.astype(jnp.float32)
    log_p = jnp.maximum(jnp.log(p), -100.0)
    log_1mp = jnp.maximum(jnp.log(1.0 - p), -100.0)
    celoss = jnp.sum(-(t * log_p + (1.0 - t) * log_1mp))
    alpha_w = t * alpha + (1.0 - t) * (1.0 - alpha)
    pt = jnp.where(t == 1.0, p, 1.0 - p)
    return jnp.sum(alpha_w * (1.0 - pt) ** gamma * celoss).astype(preds.dtype)


if __name__ == "__main__":
    key = jax.random.PRNGKey(0)
    kp, kt = jax.random.split(key)

    # Small NCHW inputs; preds in (0,1) (required by BCE), target in {0,1}.
    shape = (2, 4, 16, 16)
    preds = jax.nn.sigmoid(jax.random.normal(kp, shape, dtype=jnp.float32))
    target = (jax.random.uniform(kt, shape) > 0.5).astype(jnp.float32)

    out = focal_loss(preds, target, alpha=0.25, gamma=2)
    out = jax.block_until_ready(out)

    ref = focal_loss_ref(preds, target, alpha=0.25, gamma=2)
    assert jnp.allclose(out, ref, rtol=1e-4, atol=1e-4), (out, ref)

    print("KERNEL_OK")
</pallas_src>

<mosaic_0001>
module attributes {stable_mosaic.version = 11 : i64} {
  func.func @_focal_kernel(%arg0: i32, %arg1: memref<16x128xf32, #tpu.memory_space<vmem>>, %arg2: memref<16x128xf32, #tpu.memory_space<vmem>>, %arg3: memref<1x8x128xf32, #tpu.memory_space<vmem>>, %arg4: memref<1x8x128xf32, #tpu.memory_space<vmem>>) attributes {dimension_semantics = [#tpu.dimension_semantics<parallel>], iteration_bounds = array<i64: 1>, scalar_prefetch = 0 : i64, scratch_operands = 0 : i64, tpu.core_type = #tpu.core_type<tc>, window_params = [{transform_indices = @transform_0, window_bounds = array<i64: 16, 128>}, {transform_indices = @transform_1, window_bounds = array<i64: 16, 128>}, {transform_indices = @transform_2, window_bounds = array<i64: 1, 8, 128>}, {transform_indices = @transform_3, window_bounds = array<i64: 1, 8, 128>}]} {
    %c0 = arith.constant 0 : index
    %c0_0 = arith.constant 0 : index
    %0 = vector.load %arg1[%c0, %c0_0] : memref<16x128xf32, #tpu.memory_space<vmem>>, vector<16x128xf32>
    %c0_1 = arith.constant 0 : index
    %c0_2 = arith.constant 0 : index
    %1 = vector.load %arg2[%c0_1, %c0_2] : memref<16x128xf32, #tpu.memory_space<vmem>>, vector<16x128xf32>
    %cst = arith.constant 1.000000e+00 : f32
    %2 = vector.broadcast %cst : f32 to vector<16x128xf32>
    %3 = arith.cmpf oeq, %1, %2 : vector<16x128xf32>
    %cst_3 = arith.constant 1.000000e+00 : f32
    %4 = vector.broadcast %cst_3 : f32 to vector<16x128xf32>
    %5 = arith.subf %4, %0 : vector<16x128xf32>
    %6 = arith.select %3, %0, %5 : vector<16x128xi1>, vector<16x128xf32>
    %cst_4 = arith.constant 1.000000e+00 : f32
    %7 = vector.broadcast %cst_4 : f32 to vector<16x128xf32>
    %8 = arith.subf %7, %6 : vector<16x128xf32>
    %9 = math.log %0 : vector<16x128xf32>
    %cst_5 = arith.constant -1.000000e+02 : f32
    %10 = vector.broadcast %cst_5 : f32 to vector<16x128xf32>
    %11 = arith.maximumf %9, %10 : vector<16x128xf32>
    %cst_6 = arith.constant 1.000000e+00 : f32
    %12 = vector.broadcast %cst_6 : f32 to vector<16x128xf32>
    %13 = arith.subf %12, %0 : vector<16x128xf32>
    %14 = math.log %13 : vector<16x128xf32>
    %cst_7 = arith.constant -1.000000e+02 : f32
    %15 = vector.broadcast %cst_7 : f32 to vector<16x128xf32>
    %16 = arith.maximumf %14, %15 : vector<16x128xf32>
    %17 = arith.mulf %1, %11 : vector<16x128xf32>
    %cst_8 = arith.constant 1.000000e+00 : f32
    %18 = vector.broadcast %cst_8 : f32 to vector<16x128xf32>
    %19 = arith.subf %18, %1 : vector<16x128xf32>
    %20 = arith.mulf %19, %16 : vector<16x128xf32>
    %21 = arith.addf %17, %20 : vector<16x128xf32>
    %cst_9 = arith.constant 0.000000e+00 : f32
    %22 = vector.broadcast %cst_9 : f32 to vector<16x128xf32>
    %23 = arith.subf %22, %21 : vector<16x128xf32>
    %cst_10 = arith.constant 2.500000e-01 : f32
    %24 = vector.broadcast %cst_10 : f32 to vector<16x128xf32>
    %25 = arith.mulf %1, %24 : vector<16x128xf32>
    %cst_11 = arith.constant 1.000000e+00 : f32
    %26 = vector.broadcast %cst_11 : f32 to vector<16x128xf32>
    %27 = arith.subf %26, %1 : vector<16x128xf32>
    %cst_12 = arith.constant 7.500000e-01 : f32
    %28 = vector.broadcast %cst_12 : f32 to vector<16x128xf32>
    %29 = arith.mulf %27, %28 : vector<16x128xf32>
    %30 = arith.addf %25, %29 : vector<16x128xf32>
    %cst_13 = arith.constant 1.000000e+00 : f32
    %31 = vector.broadcast %cst_13 : f32 to vector<16x128xf32>
    %32 = arith.mulf %31, %8 : vector<16x128xf32>
    %33 = arith.mulf %32, %8 : vector<16x128xf32>
    %34 = arith.mulf %30, %33 : vector<16x128xf32>
    %35 = vector.shape_cast %23 : vector<16x128xf32> to vector<2x8x128xf32>
    %cst_14 = arith.constant dense<0.000000e+00> : vector<8x128xf32>
    %36 = vector.multi_reduction <add>, %35, %cst_14 [0] : vector<2x8x128xf32> to vector<8x128xf32>
    %c0_15 = arith.constant 0 : index
    %c0_16 = arith.constant 0 : index
    %c0_17 = arith.constant 0 : index
    %37 = vector.load %arg3[%c0_15, %c0_16, %c0_17] : memref<1x8x128xf32, #tpu.memory_space<vmem>>, vector<1x8x128xf32>
    %38 = vector.shape_cast %37 : vector<1x8x128xf32> to vector<8x128xf32>
    %39 = vector.shape_cast %36 : vector<8x128xf32> to vector<1x8x128xf32>
    tpu.vector_store %arg3[%c0_15, %c0_16, %c0_17], %39 {strides = array<i32>} : memref<1x8x128xf32, #tpu.memory_space<vmem>>, vector<1x8x128xf32>,
    %40 = vector.shape_cast %34 : vector<16x128xf32> to vector<2x8x128xf32>
    %cst_18 = arith.constant dense<0.000000e+00> : vector<8x128xf32>
    %41 = vector.multi_reduction <add>, %40, %cst_18 [0] : vector<2x8x128xf32> to vector<8x128xf32>
    %c0_19 = arith.constant 0 : index
    %c0_20 = arith.constant 0 : index
    %c0_21 = arith.constant 0 : index
    %42 = vector.load %arg4[%c0_19, %c0_20, %c0_21] : memref<1x8x128xf32, #tpu.memory_space<vmem>>, vector<1x8x128xf32>
    %43 = vector.shape_cast %42 : vector<1x8x128xf32> to vector<8x128xf32>
    %44 = vector.shape_cast %41 : vector<8x128xf32> to vector<1x8x128xf32>
    tpu.vector_store %arg4[%c0_19, %c0_20, %c0_21], %44 {strides = array<i32>} : memref<1x8x128xf32, #tpu.memory_space<vmem>>, vector<1x8x128xf32>,
    return
  }
  func.func @transform_0(%arg0: i32) -> (i32, i32) {
    %c0_i32 = arith.constant 0 : i32
    %c0_i32_0 = arith.constant 0 : i32
    return %arg0, %c0_i32 : i32, i32
  }
  func.func @transform_1(%arg0: i32) -> (i32, i32) {
    %c0_i32 = arith.constant 0 : i32
    %c0_i32_0 = arith.constant 0 : i32
    return %arg0, %c0_i32 : i32, i32
  }
  func.func @transform_2(%arg0: i32) -> (i32, i32, i32) {
    %c0_i32 = arith.constant 0 : i32
    %c0_i32_0 = arith.constant 0 : i32
    %c0_i32_1 = arith.constant 0 : i32
    return %arg0, %c0_i32, %c0_i32_0 : i32, i32, i32
  }
  func.func @transform_3(%arg0: i32) -> (i32, i32, i32) {
    %c0_i32 = arith.constant 0 : i32
    %c0_i32_0 = arith.constant 0 : i32
    %c0_i32_1 = arith.constant 0 : i32
    return %arg0, %c0_i32, %c0_i32_0 : i32, i32, i32
  }
}

</mosaic_0001>

<bundles_post_ra>
// kernel: tpu_custom_call.1
= control target key start
LH: loop header
LB: loop body
LE: loop exit
PB: predicated region body
PF: predicated region fallthrough
CT: control target
= control target key end

     0   :  { %9 = vsyncpa [#allocation3], 0  ;;  %s305_s0 = inlined_call_operand.hbm [shape: f32[16,128], index: 0, kind: input, shape index: {}]   ;;  %s306_s1 = inlined_call_operand.hbm [shape: f32[16,128], index: 1, kind: input, shape index: {}]   ;;  %s307_s2 = inlined_call_operand.hbm [shape: f32[1,8,128], index: 2, kind: output, shape index: {0}]   ;;  %s308_s3 = inlined_call_operand.hbm [shape: f32[1,8,128], index: 3, kind: output, shape index: {1}]  }
   0x1   :  { %10 = vsyncpa [#allocation6], 0 }
   0x2   :  { %11 = vsyncpa [#allocation4], 0 }
   0x3   :  { %12 = vsyncpa [#allocation9], 0  ;;  %s231_s12 = smov [#allocation2]   ;;  %s135_s16 = scalar_lea.hbm %s305_s0, 256 }
   0x4   :  { %s18_s13 = sshll.u32 %s231_s12, 4  ;;  %p136_p0 = scmp.ne.s32.totalorder %s305_s0, %s135_s16  ;;  %s19_s13 = int_to_ptr.vmem [resolvable:$true] %s18_s13 }
   0x5   :  { %p139_p1 = scmp.lt.u32.totalorder %s135_s16, %s305_s0 }
   0x7   :  { %p141_p2 = pnand %p139_p1, %p136_p0 }
   0x9   :  { %144 = shalt.err (!%p141_p2)
}
   0xa   :  { %s145_s21 = scalar_lea.vmem %s19_s13, 256  ;;  %p150_p4 = scmp.lt.s32.totalorder %s19_s13, %s19_s13 }
   0xb   :  { %p146_p3 = scmp.ne.s32.totalorder %s19_s13, %s145_s21  ;;  %p151_p5 = scmp.lt.s32.totalorder %s145_s21, %s145_s21 }
   0xd   :  { %p152_p6 = por %p151_p5, %p150_p4 }
   0xf   :  { %p153_p7 = pnand %p152_p6, %p146_p3 }
  0x11   :  { %156 = shalt.err (!%p153_p7)
}
  0x12   :  { %s232_s22 = smov 128   ;;  %s233_s23 = smov 8  }
  0x13   :  { %24 = dma.hbm_to_vmem [thread:$0]  %s305_s0, 256, %s19_s13, [#allocation3], %s232_s22, %s232_s22, %s233_s23  }
  0x14   :  { %s234_s26 = smov [#allocation5]   ;;  %s157_s30 = scalar_lea.hbm %s306_s1, 256 }
  0x15   :  { %s30_s27 = sshll.u32 %s234_s26, 4  ;;  %p158_p8 = scmp.ne.s32.totalorder %s306_s1, %s157_s30  ;;  %s31_s27 = int_to_ptr.vmem [resolvable:$true] %s30_s27 }
  0x16   :  { %p161_p9 = scmp.lt.u32.totalorder %s157_s30, %s306_s1 }
  0x18   :  { %p163_p10 = pnand %p161_p9, %p158_p8 }
  0x1a   :  { %166 = shalt.err (!%p163_p10)
}
  0x1b   :  { %s167_s8 = scalar_lea.vmem %s31_s27, 256  ;;  %p172_p12 = scmp.lt.s32.totalorder %s31_s27, %s31_s27 }
  0x1c   :  { %p168_p11 = scmp.ne.s32.totalorder %s31_s27, %s167_s8  ;;  %p173_p13 = scmp.lt.s32.totalorder %s167_s8, %s167_s8 }
  0x1e   :  { %p174_p0 = por %p173_p13, %p172_p12 }
  0x20   :  { %p175_p1 = pnand %p174_p0, %p168_p11 }
  0x22   :  { %178 = shalt.err (!%p175_p1)
}
  0x23   :  { %36 = dma.hbm_to_vmem [thread:$0]  %s306_s1, 256, %s31_s27, [#allocation6], %s232_s22, %s232_s22, %s233_s23  }
  0x24   :  { %223 = dma.done.wait [#allocation3], 256  }
  0x25   :  { %224 = vsyncadd [#allocation3], 4294967040 }
  0x26   :  { %225 = dma.done.wait [#allocation6], 256  }
  0x27   :  { %226 = vsyncadd [#allocation6], 4294967040  ;;  %v43_v0 = vld [vmem:[#allocation2] sm:$0xff]  ;;  %v44_v1 = vld [vmem:[#allocation2 + $0x8] sm:$0xff]  ;;  %s235_s1 = smov [#allocation8]  }
  0x28   :  { %v45_v2 = vld [vmem:[#allocation5] sm:$0xff]  ;;  %v46_v3 = vld [vmem:[#allocation5 + $0x8] sm:$0xff]  ;;  %v49_v4 = vsub.f32 1.0, %v43_v0  ;;  %v50_v5 = vsub.f32 1.0, %v44_v1  ;;  %127 = vlog2.f32 %v43_v0  ;;  %s107_s10 = sshll.u32 %s235_s1, 4  ;;  %s108_s10 = int_to_ptr.vmem [resolvable:$true] %s107_s10 }
  0x29   :  { %v69_v6 = vsub.f32 1.0, %v45_v2  ;;  %129 = vlog2.f32 %v44_v1  ;;  %v70_v7 = vsub.f32 1.0, %v46_v3  ;;  %vm47_vm0 = vcmp.eq.f32.partialorder %v45_v2, 1.0  ;;  %s179_s11 = scalar_lea.vmem %s108_s10, 128  ;;  %p184_p3 = scmp.lt.s32.totalorder %s108_s10, %s108_s10 }
  0x2a   :  { %vm48_vm1 = vcmp.eq.f32.partialorder %v46_v3, 1.0  ;;  %131 = vlog2.f32 %v49_v4  ;;  %v51_v8 = vsel %vm47_vm0, %v43_v0, %v49_v4  ;;  %v77_v10 = vmul.f32 0.25, %v45_v2  ;;  %p180_p2 = scmp.ne.s32.totalorder %s108_s10, %s179_s11  ;;  %p185_p4 = scmp.lt.s32.totalorder %s179_s11, %s179_s11 }
  0x2b   :  { %v52_v9 = vsel %vm48_vm1, %v44_v1, %v50_v5  ;;  %133 = vlog2.f32 %v50_v5  ;;  %v53_v11 = vsub.f32 1.0, %v51_v8  ;;  %v78_v13 = vmul.f32 0.25, %v46_v3 }
  0x2c   :  { %v54_v12 = vsub.f32 1.0, %v52_v9  ;;  %v79_v14 = vmul.f32 0.75, %v69_v6  ;;  %v80_v15 = vmul.f32 0.75, %v70_v7  ;;  %p186_p5 = por %p185_p4, %p184_p3 }
  0x2d   :  { %v83_v16 = vmul.f32 %v53_v11, %v53_v11 }
  0x2e   :  { %v84_v17 = vmul.f32 %v54_v12, %v54_v12  ;;  %v81_v18 = vadd.f32 %v79_v14, %v77_v10  ;;  %v82_v19 = vadd.f32 %v80_v15, %v78_v13  ;;  %p187_p6 = pnand %p186_p5, %p180_p2 }
  0x30   :  { %v85_v20 = vmul.f32 %v83_v16, %v81_v18  ;;  %v86_v21 = vmul.f32 %v84_v17, %v82_v19 }
  0x32   :  { %v128_v22 = vpop.eup %127  ;;  %v89_v23 = vadd.f32 %v86_v21, %v85_v20 }
  0x33   :  { %v130_v24 = vpop.eup %129  ;;  %v56_v25 = vmul.f32 0.6931472, %v128_v22 }
  0x34   :  { %v132_v26 = vpop.eup %131  ;;  %v58_v27 = vmul.f32 0.6931472, %v130_v24  ;;  %90 = vst [vmem:[#allocation8] sm:$0xff] %v89_v23 }
  0x35   :  { %v134_v28 = vpop.eup %133  ;;  %v59_v29 = vmax.f32 %v56_v25, -100.0  ;;  %v62_v30 = vmul.f32 0.6931472, %v132_v26 }
  0x36   :  { %190 = shalt.err (!%p187_p6)
}
  0x37   :  { %s191_s14 = scalar_lea.hbm %s308_s3, 128 }
  0x38   :  { %p192_p7 = scmp.ne.s32.totalorder %s308_s3, %s191_s14  ;;  %p195_p8 = scmp.lt.u32.totalorder %s191_s14, %s308_s3 }
  0x3a   :  { %p197_p9 = pnand %p195_p8, %p192_p7 }
  0x3c   :  { %200 = shalt.err (!%p197_p9)
}
  0x3d   :  { %110 = dma.vmem_to_hbm [thread:$0]  %s108_s10, 128, %s308_s3, [#allocation9]   ;;  %v60_v31 = vmax.f32 %v58_v27, -100.0  ;;  %v64_v32 = vmul.f32 0.6931472, %v134_v28  ;;  %v65_v33 = vmax.f32 %v62_v30, -100.0  ;;  %v67_v34 = vmul.f32 %v59_v29, %v45_v2 }
  0x3e   :  { %s236_s21 = smov [#allocation7]  }
  0x3f   :  { %v66_v35 = vmax.f32 %v64_v32, -100.0  ;;  %v68_v36 = vmul.f32 %v60_v31, %v46_v3  ;;  %v71_v37 = vmul.f32 %v69_v6, %v65_v33  ;;  %s97_s22 = sshll.u32 %s236_s21, 4  ;;  %s98_s22 = int_to_ptr.vmem [resolvable:$true] %s97_s22 }
  0x40   :  { %s201_s23 = scalar_lea.vmem %s98_s22, 128  ;;  %p206_p11 = scmp.lt.s32.totalorder %s98_s22, %s98_s22 }
  0x41   :  { %v72_v38 = vmul.f32 %v70_v7, %v66_v35  ;;  %v73_v39 = vadd.f32 %v71_v37, %v67_v34  ;;  %p202_p10 = scmp.ne.s32.totalorder %s98_s22, %s201_s23  ;;  %p207_p12 = scmp.lt.s32.totalorder %s201_s23, %s201_s23 }
  0x43   :  { %v74_v40 = vadd.f32 %v72_v38, %v68_v36  ;;  %v75_v41 = vsub.f32 0.0, %v73_v39  ;;  %p208_p13 = por %p207_p12, %p206_p11 }
  0x45   :  { %v76_v42 = vsub.f32 0.0, %v74_v40  ;;  %p209_p0 = pnand %p208_p13, %p202_p10 }
  0x47   :  { %v87_v43 = vadd.f32 %v76_v42, %v75_v41 }
  0x49   :  { %88 = vst [vmem:[#allocation7] sm:$0xff] %v87_v43 }
  0x4a   :  { %212 = shalt.err (!%p209_p0)
}
  0x4b   :  { %s213_s25 = scalar_lea.hbm %s307_s2, 128 }
  0x4c   :  { %p214_p1 = scmp.ne.s32.totalorder %s307_s2, %s213_s25  ;;  %p217_p2 = scmp.lt.u32.totalorder %s213_s25, %s307_s2 }
  0x4e   :  { %p219_p3 = pnand %p217_p2, %p214_p1 }
  0x50   :  { %222 = shalt.err (!%p219_p3)
}
  0x51   :  { %100 = dma.vmem_to_hbm [thread:$0]  %s98_s22, 128, %s307_s2, [#allocation4]  }
  0x52   :  { %227 = dma.done.wait [#allocation4], 128  }
  0x53   :  { %228 = vsyncadd [#allocation4], 4294967168 }
  0x54   :  { %229 = dma.done.wait [#allocation9], 128  }
  0x55   :  { %230 = vsyncadd [#allocation9], 4294967168 }
  0x56   :  { %117 = vsyncpa [#allocation3], 1 }
  0x57   :  { %118 = vsyncpa [#allocation6], 1 }
  0x58   :  { %119 = vsyncpa [#allocation4], 1 }
  0x59   :  { %120 = vsyncpa [#allocation9], 1 }

</bundles_post_ra>
